<compile_context>
chip_gen: v5e
topology: v5e:2x2
jax: 0.10.0
libtpu: 0.0.40
codegen_flags: <defaults>
</compile_context>

<pallas_src>
import math

import numpy as np

import jax
import jax.numpy as jnp
from jax.experimental import pallas as pl
from jax.experimental.pallas import tpu as pltpu

LN_EPS = 1e-5


def mlp_embedding_kernel(
    x_ref, seg_ref,
    w1_ref, b1_ref, g1_ref, be1_ref,
    w2_ref, b2_ref, g2_ref, be2_ref,
    w3_ref, b3_ref, g3_ref, be3_ref,
    o_ref,
):
    x = x_ref[...].astype(jnp.float32)      # (tn, P*in_c)
    seg = seg_ref[...]                      # (P*out_c, P*out_c) segment-avg matrix

    def seg_layer_norm(h, gamma, beta):
        # Per-out_c-lane-segment LayerNorm.  `seg` is block-diagonal with
        # ones/out_c blocks, so these dots are segment means on the MXU
        # (frees the XLU from cross-lane reductions).  Block-diagonality
        # guarantees no mixing between the P packed logical rows.
        mean = jnp.dot(h, seg, preferred_element_type=jnp.float32)
        c = h - mean
        var = jnp.dot(c * c, seg, preferred_element_type=jnp.float32)
        return c * jax.lax.rsqrt(var + LN_EPS) * gamma + beta

    # Block 1: Linear -> LayerNorm -> ReLU
    h = jnp.dot(x, w1_ref[...], preferred_element_type=jnp.float32) + b1_ref[...]
    h = jnp.maximum(seg_layer_norm(h, g1_ref[...], be1_ref[...]), 0.0)
    # Block 2: Linear -> LayerNorm -> ReLU
    h = jnp.dot(h, w2_ref[...], preferred_element_type=jnp.float32) + b2_ref[...]
    h = jnp.maximum(seg_layer_norm(h, g2_ref[...], be2_ref[...]), 0.0)
    # Block 3: Linear -> LayerNorm
    h = jnp.dot(h, w3_ref[...], preferred_element_type=jnp.float32) + b3_ref[...]
    h = seg_layer_norm(h, g3_ref[...], be3_ref[...])

    o_ref[...] = h.astype(o_ref.dtype)


def mlp_embedding(x, params, *, tile_rows=8192, out_dtype=None):
    """x: (..., in_channel) float32. params: dict of weights/biases (W stored
    as (fan_in, fan_out) so the kernel computes x @ W + b)."""
    *lead, in_c = x.shape
    out_c = params["w1"].shape[1]
    if out_dtype is None:
        out_dtype = x.dtype

    x2 = x.reshape(-1, in_c)
    n = x2.shape[0]

    # Pack P logical rows per 128-lane row so the output slab is lane-dense.
    P = 128 // out_c if (128 % out_c == 0) else 1

    # Pad rows so the packed row count is a multiple of 8 (sublane rule);
    # padded rows are independent (per-row LN) and sliced off afterwards.
    row_group = P * 8
    n_pad = ((n + row_group - 1) // row_group) * row_group
    if n_pad != n:
        x2 = jnp.pad(x2, ((0, n_pad - n), (0, 0)))
    n_packed = n_pad // P
    x_packed = x2.reshape(n_packed, P * in_c)   # free reinterpretation

    # Row tile (packed rows): biggest that fits comfortably, multiple of 8.
    tn = max(8, min(tile_rows // P, n_packed))
    tn = (tn // 8) * 8
    grid = (pl.cdiv(n_packed, tn),)

    f32 = jnp.float32
    eye = jnp.eye(P, dtype=f32)

    def bd(w):        # block-diagonal replication: P copies on the diagonal
        return jnp.kron(eye, w.astype(f32))

    def tile_v(v):    # replicate bias / gamma / beta across the P segments
        return jnp.tile(v.astype(f32).reshape(1, -1), (1, P))

    # Constant segment-averaging matrix for the per-32-lane LayerNorm.
    seg = jnp.kron(eye, jnp.full((out_c, out_c), 1.0 / out_c, f32))

    args = (
        x_packed, seg,
        bd(params["w1"]), tile_v(params["b1"]), tile_v(params["g1"]), tile_v(params["be1"]),
        bd(params["w2"]), tile_v(params["b2"]), tile_v(params["g2"]), tile_v(params["be2"]),
        bd(params["w3"]), tile_v(params["b3"]), tile_v(params["g3"]), tile_v(params["be3"]),
    )

    def row_map(i):
        return (i, 0)

    def const_map(i):
        return (0, 0)

    spec_w1 = pl.BlockSpec((P * in_c, P * out_c), const_map)
    spec_w = pl.BlockSpec((P * out_c, P * out_c), const_map)
    spec_v = pl.BlockSpec((1, P * out_c), const_map)

    in_specs = [
        pl.BlockSpec((tn, P * in_c), row_map),                     # x slab
        spec_w,                                                    # seg matrix
        spec_w1, spec_v, spec_v, spec_v,                           # layer 1
        spec_w,  spec_v, spec_v, spec_v,                           # layer 2
        spec_w,  spec_v, spec_v, spec_v,                           # layer 3
    ]
    out_specs = pl.BlockSpec((tn, P * out_c), row_map)

    out = pl.pallas_call(
        mlp_embedding_kernel,
        out_shape=jax.ShapeDtypeStruct((n_packed, P * out_c), out_dtype),
        grid=grid,
        in_specs=in_specs,
        out_specs=out_specs,
        compiler_params=pltpu.CompilerParams(
            dimension_semantics=("parallel",),
            vmem_limit_bytes=32 * 1024 * 1024,
        ),
    )(*args)

    out = out.reshape(n_pad, out_c)[:n]      # free reinterpretation + slice
    return out.reshape(*lead, out_c)


def xavier_uniform(key, fan_in, fan_out, dtype=jnp.float32):
    bound = math.sqrt(6.0 / (fan_in + fan_out))
    # stored as (fan_in, fan_out) so kernel does x @ W (== PyTorch x @ W.T)
    return jax.random.uniform(key, (fan_in, fan_out), dtype, -bound, bound)


def init_params(key, in_channel, out_channel):
    k1, k2, k3 = jax.random.split(key, 3)
    f32 = jnp.float32
    return {
        "w1": xavier_uniform(k1, in_channel, out_channel),
        "b1": jnp.zeros((out_channel,), f32),
        "g1": jnp.ones((out_channel,), f32),
        "be1": jnp.zeros((out_channel,), f32),
        "w2": xavier_uniform(k2, out_channel, out_channel),
        "b2": jnp.zeros((out_channel,), f32),
        "g2": jnp.ones((out_channel,), f32),
        "be2": jnp.zeros((out_channel,), f32),
        "w3": xavier_uniform(k3, out_channel, out_channel),
        "b3": jnp.zeros((out_channel,), f32),
        "g3": jnp.ones((out_channel,), f32),
        "be3": jnp.zeros((out_channel,), f32),
    }


def reference_forward_np(x, p):
    # float64 numpy reference (avoids TPU default-precision matmul ambiguity).
    def ln(h, g, b):
        m = h.mean(axis=-1, keepdims=True)
        c = h - m
        v = (c * c).mean(axis=-1, keepdims=True)
        return c / np.sqrt(v + LN_EPS) * g + b

    h = x @ p["w1"] + p["b1"]
    h = np.maximum(ln(h, p["g1"], p["be1"]), 0.0)
    h = h @ p["w2"] + p["b2"]
    h = np.maximum(ln(h, p["g2"], p["be2"]), 0.0)
    h = h @ p["w3"] + p["b3"]
    return ln(h, p["g3"], p["be3"])


if __name__ == "__main__":
    in_channel, out_channel = 16, 32
    batch = 64

    key = jax.random.PRNGKey(0)
    kx, kp = jax.random.split(key)
    x = jax.random.normal(kx, (batch, in_channel), jnp.float32)
    params = init_params(kp, in_channel, out_channel)

    out = jax.block_until_ready(mlp_embedding(x, params))

    xd = np.asarray(x, dtype=np.float64)
    pd = {k: np.asarray(v, dtype=np.float64) for k, v in params.items()}
    ref = reference_forward_np(xd, pd)

    assert out.shape == (batch, out_channel), out.shape
    assert np.allclose(np.asarray(out, np.float64), ref, atol=1e-4, rtol=1e-4), \
        "mismatch vs reference"

    print("KERNEL_OK")
</pallas_src>

<mosaic_0001>
module attributes {stable_mosaic.version = 11 : i64} {
  func.func @mlp_embedding_kernel(%arg0: i32, %arg1: memref<16x64xf32, #tpu.memory_space<vmem>>, %arg2: memref<128x128xf32, #tpu.memory_space<vmem>>, %arg3: memref<64x128xf32, #tpu.memory_space<vmem>>, %arg4: memref<1x128xf32, #tpu.memory_space<vmem>>, %arg5: memref<1x128xf32, #tpu.memory_space<vmem>>, %arg6: memref<1x128xf32, #tpu.memory_space<vmem>>, %arg7: memref<128x128xf32, #tpu.memory_space<vmem>>, %arg8: memref<1x128xf32, #tpu.memory_space<vmem>>, %arg9: memref<1x128xf32, #tpu.memory_space<vmem>>, %arg10: memref<1x128xf32, #tpu.memory_space<vmem>>, %arg11: memref<128x128xf32, #tpu.memory_space<vmem>>, %arg12: memref<1x128xf32, #tpu.memory_space<vmem>>, %arg13: memref<1x128xf32, #tpu.memory_space<vmem>>, %arg14: memref<1x128xf32, #tpu.memory_space<vmem>>, %arg15: memref<16x128xf32, #tpu.memory_space<vmem>>) attributes {dimension_semantics = [#tpu.dimension_semantics<parallel>], iteration_bounds = array<i64: 1>, scalar_prefetch = 0 : i64, scratch_operands = 0 : i64, tpu.core_type = #tpu.core_type<tc>, window_params = [{transform_indices = @transform_0, window_bounds = array<i64: 16, 64>}, {pipeline_mode = #tpu.pipeline_mode<synchronous>, transform_indices = @transform_1, window_bounds = array<i64: 128, 128>}, {pipeline_mode = #tpu.pipeline_mode<synchronous>, transform_indices = @transform_2, window_bounds = array<i64: 64, 128>}, {pipeline_mode = #tpu.pipeline_mode<synchronous>, transform_indices = @transform_3, window_bounds = array<i64: 1, 128>}, {pipeline_mode = #tpu.pipeline_mode<synchronous>, transform_indices = @transform_4, window_bounds = array<i64: 1, 128>}, {pipeline_mode = #tpu.pipeline_mode<synchronous>, transform_indices = @transform_5, window_bounds = array<i64: 1, 128>}, {pipeline_mode = #tpu.pipeline_mode<synchronous>, transform_indices = @transform_6, window_bounds = array<i64: 128, 128>}, {pipeline_mode = #tpu.pipeline_mode<synchronous>, transform_indices = @transform_7, window_bounds = array<i64: 1, 128>}, {pipeline_mode = #tpu.pipeline_mode<synchronous>, transform_indices = @transform_8, window_bounds = array<i64: 1, 128>}, {pipeline_mode = #tpu.pipeline_mode<synchronous>, transform_indices = @transform_9, window_bounds = array<i64: 1, 128>}, {pipeline_mode = #tpu.pipeline_mode<synchronous>, transform_indices = @transform_10, window_bounds = array<i64: 128, 128>}, {pipeline_mode = #tpu.pipeline_mode<synchronous>, transform_indices = @transform_11, window_bounds = array<i64: 1, 128>}, {pipeline_mode = #tpu.pipeline_mode<synchronous>, transform_indices = @transform_12, window_bounds = array<i64: 1, 128>}, {pipeline_mode = #tpu.pipeline_mode<synchronous>, transform_indices = @transform_13, window_bounds = array<i64: 1, 128>}, {transform_indices = @transform_14, window_bounds = array<i64: 16, 128>}]} {
    %c0 = arith.constant 0 : index
    %c0_0 = arith.constant 0 : index
    %0 = vector.load %arg1[%c0, %c0_0] : memref<16x64xf32, #tpu.memory_space<vmem>>, vector<16x64xf32>
    %c0_1 = arith.constant 0 : index
    %c0_2 = arith.constant 0 : index
    %1 = vector.load %arg2[%c0_1, %c0_2] : memref<128x128xf32, #tpu.memory_space<vmem>>, vector<128x128xf32>
    %c0_3 = arith.constant 0 : index
    %c0_4 = arith.constant 0 : index
    %2 = vector.load %arg3[%c0_3, %c0_4] : memref<64x128xf32, #tpu.memory_space<vmem>>, vector<64x128xf32>
    %cst = arith.constant dense<0.000000e+00> : vector<16x128xf32>
    %3 = tpu.matmul %0, %2, %cst {dimension_numbers = #tpu.dot_dimension_numbers<[1], [0], [0], [1], [0, 0, 1, 1], [], []>} : vector<16x64xf32>, vector<64x128xf32>, vector<16x128xf32> -> vector<16x128xf32>
    %c0_5 = arith.constant 0 : index
    %c0_6 = arith.constant 0 : index
    %4 = vector.load %arg4[%c0_5, %c0_6] : memref<1x128xf32, #tpu.memory_space<vmem>>, vector<1x128xf32>
    %5 = vector.broadcast %4 : vector<1x128xf32> to vector<16x128xf32>
    %6 = arith.addf %3, %5 : vector<16x128xf32>
    %c0_7 = arith.constant 0 : index
    %c0_8 = arith.constant 0 : index
    %7 = vector.load %arg5[%c0_7, %c0_8] : memref<1x128xf32, #tpu.memory_space<vmem>>, vector<1x128xf32>
    %c0_9 = arith.constant 0 : index
    %c0_10 = arith.constant 0 : index
    %8 = vector.load %arg6[%c0_9, %c0_10] : memref<1x128xf32, #tpu.memory_space<vmem>>, vector<1x128xf32>
    %cst_11 = arith.constant dense<0.000000e+00> : vector<16x128xf32>
    %9 = tpu.matmul %6, %1, %cst_11 {dimension_numbers = #tpu.dot_dimension_numbers<[1], [0], [0], [1], [0, 0, 1, 1], [], []>} : vector<16x128xf32>, vector<128x128xf32>, vector<16x128xf32> -> vector<16x128xf32>
    %10 = arith.subf %6, %9 : vector<16x128xf32>
    %11 = arith.mulf %10, %10 : vector<16x128xf32>
    %cst_12 = arith.constant dense<0.000000e+00> : vector<16x128xf32>
    %12 = tpu.matmul %11, %1, %cst_12 {dimension_numbers = #tpu.dot_dimension_numbers<[1], [0], [0], [1], [0, 0, 1, 1], [], []>} : vector<16x128xf32>, vector<128x128xf32>, vector<16x128xf32> -> vector<16x128xf32>
    %cst_13 = arith.constant 9.99999974E-6 : f32
    %13 = vector.broadcast %cst_13 : f32 to vector<16x128xf32>
    %14 = arith.addf %12, %13 : vector<16x128xf32>
    %15 = math.rsqrt %14 : vector<16x128xf32>
    %16 = arith.mulf %10, %15 : vector<16x128xf32>
    %17 = vector.broadcast %7 : vector<1x128xf32> to vector<16x128xf32>
    %18 = arith.mulf %16, %17 : vector<16x128xf32>
    %19 = vector.broadcast %8 : vector<1x128xf32> to vector<16x128xf32>
    %20 = arith.addf %18, %19 : vector<16x128xf32>
    %cst_14 = arith.constant 0.000000e+00 : f32
    %21 = vector.broadcast %cst_14 : f32 to vector<16x128xf32>
    %22 = arith.maximumf %20, %21 : vector<16x128xf32>
    %c0_15 = arith.constant 0 : index
    %c0_16 = arith.constant 0 : index
    %23 = vector.load %arg7[%c0_15, %c0_16] : memref<128x128xf32, #tpu.memory_space<vmem>>, vector<128x128xf32>
    %cst_17 = arith.constant dense<0.000000e+00> : vector<16x128xf32>
    %24 = tpu.matmul %22, %23, %cst_17 {dimension_numbers = #tpu.dot_dimension_numbers<[1], [0], [0], [1], [0, 0, 1, 1], [], []>} : vector<16x128xf32>, vector<128x128xf32>, vector<16x128xf32> -> vector<16x128xf32>
    %c0_18 = arith.constant 0 : index
    %c0_19 = arith.constant 0 : index
    %25 = vector.load %arg8[%c0_18, %c0_19] : memref<1x128xf32, #tpu.memory_space<vmem>>, vector<1x128xf32>
    %26 = vector.broadcast %25 : vector<1x128xf32> to vector<16x128xf32>
    %27 = arith.addf %24, %26 : vector<16x128xf32>
    %c0_20 = arith.constant 0 : index
    %c0_21 = arith.constant 0 : index
    %28 = vector.load %arg9[%c0_20, %c0_21] : memref<1x128xf32, #tpu.memory_space<vmem>>, vector<1x128xf32>
    %c0_22 = arith.constant 0 : index
    %c0_23 = arith.constant 0 : index
    %29 = vector.load %arg10[%c0_22, %c0_23] : memref<1x128xf32, #tpu.memory_space<vmem>>, vector<1x128xf32>
    %cst_24 = arith.constant dense<0.000000e+00> : vector<16x128xf32>
    %30 = tpu.matmul %27, %1, %cst_24 {dimension_numbers = #tpu.dot_dimension_numbers<[1], [0], [0], [1], [0, 0, 1, 1], [], []>} : vector<16x128xf32>, vector<128x128xf32>, vector<16x128xf32> -> vector<16x128xf32>
    %31 = arith.subf %27, %30 : vector<16x128xf32>
    %32 = arith.mulf %31, %31 : vector<16x128xf32>
    %cst_25 = arith.constant dense<0.000000e+00> : vector<16x128xf32>
    %33 = tpu.matmul %32, %1, %cst_25 {dimension_numbers = #tpu.dot_dimension_numbers<[1], [0], [0], [1], [0, 0, 1, 1], [], []>} : vector<16x128xf32>, vector<128x128xf32>, vector<16x128xf32> -> vector<16x128xf32>
    %cst_26 = arith.constant 9.99999974E-6 : f32
    %34 = vector.broadcast %cst_26 : f32 to vector<16x128xf32>
    %35 = arith.addf %33, %34 : vector<16x128xf32>
    %36 = math.rsqrt %35 : vector<16x128xf32>
    %37 = arith.mulf %31, %36 : vector<16x128xf32>
    %38 = vector.broadcast %28 : vector<1x128xf32> to vector<16x128xf32>
    %39 = arith.mulf %37, %38 : vector<16x128xf32>
    %40 = vector.broadcast %29 : vector<1x128xf32> to vector<16x128xf32>
    %41 = arith.addf %39, %40 : vector<16x128xf32>
    %cst_27 = arith.constant 0.000000e+00 : f32
    %42 = vector.broadcast %cst_27 : f32 to vector<16x128xf32>
    %43 = arith.maximumf %41, %42 : vector<16x128xf32>
    %c0_28 = arith.constant 0 : index
    %c0_29 = arith.constant 0 : index
    %44 = vector.load %arg11[%c0_28, %c0_29] : memref<128x128xf32, #tpu.memory_space<vmem>>, vector<128x128xf32>
    %cst_30 = arith.constant dense<0.000000e+00> : vector<16x128xf32>
    %45 = tpu.matmul %43, %44, %cst_30 {dimension_numbers = #tpu.dot_dimension_numbers<[1], [0], [0], [1], [0, 0, 1, 1], [], []>} : vector<16x128xf32>, vector<128x128xf32>, vector<16x128xf32> -> vector<16x128xf32>
    %c0_31 = arith.constant 0 : index
    %c0_32 = arith.constant 0 : index
    %46 = vector.load %arg12[%c0_31, %c0_32] : memref<1x128xf32, #tpu.memory_space<vmem>>, vector<1x128xf32>
    %47 = vector.broadcast %46 : vector<1x128xf32> to vector<16x128xf32>
    %48 = arith.addf %45, %47 : vector<16x128xf32>
    %c0_33 = arith.constant 0 : index
    %c0_34 = arith.constant 0 : index
    %49 = vector.load %arg13[%c0_33, %c0_34] : memref<1x128xf32, #tpu.memory_space<vmem>>, vector<1x128xf32>
    %c0_35 = arith.constant 0 : index
    %c0_36 = arith.constant 0 : index
    %50 = vector.load %arg14[%c0_35, %c0_36] : memref<1x128xf32, #tpu.memory_space<vmem>>, vector<1x128xf32>
    %cst_37 = arith.constant dense<0.000000e+00> : vector<16x128xf32>
    %51 = tpu.matmul %48, %1, %cst_37 {dimension_numbers = #tpu.dot_dimension_numbers<[1], [0], [0], [1], [0, 0, 1, 1], [], []>} : vector<16x128xf32>, vector<128x128xf32>, vector<16x128xf32> -> vector<16x128xf32>
    %52 = arith.subf %48, %51 : vector<16x128xf32>
    %53 = arith.mulf %52, %52 : vector<16x128xf32>
    %cst_38 = arith.constant dense<0.000000e+00> : vector<16x128xf32>
    %54 = tpu.matmul %53, %1, %cst_38 {dimension_numbers = #tpu.dot_dimension_numbers<[1], [0], [0], [1], [0, 0, 1, 1], [], []>} : vector<16x128xf32>, vector<128x128xf32>, vector<16x128xf32> -> vector<16x128xf32>
    %cst_39 = arith.constant 9.99999974E-6 : f32
    %55 = vector.broadcast %cst_39 : f32 to vector<16x128xf32>
    %56 = arith.addf %54, %55 : vector<16x128xf32>
    %57 = math.rsqrt %56 : vector<16x128xf32>
    %58 = arith.mulf %52, %57 : vector<16x128xf32>
    %59 = vector.broadcast %49 : vector<1x128xf32> to vector<16x128xf32>
    %60 = arith.mulf %58, %59 : vector<16x128xf32>
    %61 = vector.broadcast %50 : vector<1x128xf32> to vector<16x128xf32>
    %62 = arith.addf %60, %61 : vector<16x128xf32>
    %c0_40 = arith.constant 0 : index
    %c0_41 = arith.constant 0 : index
    %63 = vector.load %arg15[%c0_40, %c0_41] : memref<16x128xf32, #tpu.memory_space<vmem>>, vector<16x128xf32>
    tpu.vector_store %arg15[%c0_40, %c0_41], %62 {strides = array<i32>} : memref<16x128xf32, #tpu.memory_space<vmem>>, vector<16x128xf32>,
    return
  }
  func.func @transform_0(%arg0: i32) -> (i32, i32) {
    %c0_i32 = arith.constant 0 : i32
    %c0_i32_0 = arith.constant 0 : i32
    return %arg0, %c0_i32 : i32, i32
  }
  func.func @transform_1(%arg0: i32) -> (i32, i32) {
    %c0_i32 = arith.constant 0 : i32
    %c0_i32_0 = arith.constant 0 : i32
    %c0_i32_1 = arith.constant 0 : i32
    return %c0_i32, %c0_i32_0 : i32, i32
  }
  func.func @transform_2(%arg0: i32) -> (i32, i32) {
    %c0_i32 = arith.constant 0 : i32
    %c0_i32_0 = arith.constant 0 : i32
    %c0_i32_1 = arith.constant 0 : i32
    return %c0_i32, %c0_i32_0 : i32, i32
  }
  func.func @transform_3(%arg0: i32) -> (i32, i32) {
    %c0_i32 = arith.constant 0 : i32
    %c0_i32_0 = arith.constant 0 : i32
    %c0_i32_1 = arith.constant 0 : i32
    return %c0_i32, %c0_i32_0 : i32, i32
  }
  func.func @transform_4(%arg0: i32) -> (i32, i32) {
    %c0_i32 = arith.constant 0 : i32
    %c0_i32_0 = arith.constant 0 : i32
    %c0_i32_1 = arith.constant 0 : i32
    return %c0_i32, %c0_i32_0 : i32, i32
  }
  func.func @transform_5(%arg0: i32) -> (i32, i32) {
    %c0_i32 = arith.constant 0 : i32
    %c0_i32_0 = arith.constant 0 : i32
    %c0_i32_1 = arith.constant 0 : i32
    return %c0_i32, %c0_i32_0 : i32, i32
  }
  func.func @transform_6(%arg0: i32) -> (i32, i32) {
    %c0_i32 = arith.constant 0 : i32
    %c0_i32_0 = arith.constant 0 : i32
    %c0_i32_1 = arith.constant 0 : i32
    return %c0_i32, %c0_i32_0 : i32, i32
  }
  func.func @transform_7(%arg0: i32) -> (i32, i32) {
    %c0_i32 = arith.constant 0 : i32
    %c0_i32_0 = arith.constant 0 : i32
    %c0_i32_1 = arith.constant 0 : i32
    return %c0_i32, %c0_i32_0 : i32, i32
  }
  func.func @transform_8(%arg0: i32) -> (i32, i32) {
    %c0_i32 = arith.constant 0 : i32
    %c0_i32_0 = arith.constant 0 : i32
    %c0_i32_1 = arith.constant 0 : i32
    return %c0_i32, %c0_i32_0 : i32, i32
  }
  func.func @transform_9(%arg0: i32) -> (i32, i32) {
    %c0_i32 = arith.constant 0 : i32
    %c0_i32_0 = arith.constant 0 : i32
    %c0_i32_1 = arith.constant 0 : i32
    return %c0_i32, %c0_i32_0 : i32, i32
  }
  func.func @transform_10(%arg0: i32) -> (i32, i32) {
    %c0_i32 = arith.constant 0 : i32
    %c0_i32_0 = arith.constant 0 : i32
    %c0_i32_1 = arith.constant 0 : i32
    return %c0_i32, %c0_i32_0 : i32, i32
  }
  func.func @transform_11(%arg0: i32) -> (i32, i32) {
    %c0_i32 = arith.constant 0 : i32
    %c0_i32_0 = arith.constant 0 : i32
    %c0_i32_1 = arith.constant 0 : i32
    return %c0_i32, %c0_i32_0 : i32, i32
  }
  func.func @transform_12(%arg0: i32) -> (i32, i32) {
    %c0_i32 = arith.constant 0 : i32
    %c0_i32_0 = arith.constant 0 : i32
    %c0_i32_1 = arith.constant 0 : i32
    return %c0_i32, %c0_i32_0 : i32, i32
  }
  func.func @transform_13(%arg0: i32) -> (i32, i32) {
    %c0_i32 = arith.constant 0 : i32
    %c0_i32_0 = arith.constant 0 : i32
    %c0_i32_1 = arith.constant 0 : i32
    return %c0_i32, %c0_i32_0 : i32, i32
  }
  func.func @transform_14(%arg0: i32) -> (i32, i32) {
    %c0_i32 = arith.constant 0 : i32
    %c0_i32_0 = arith.constant 0 : i32
    return %arg0, %c0_i32 : i32, i32
  }
}

</mosaic_0001>

<bundles_post_ra>
// kernel: tpu_custom_call.1
= control target key start
LH: loop header
LB: loop body
LE: loop exit
PB: predicated region body
PF: predicated region fallthrough
CT: control target
= control target key end

     0   :  { %19 = vsyncpa [#allocation3], 0  ;;  %s1025_s0 = inlined_call_operand.hbm [shape: f32[16,64], index: 0, kind: input, shape index: {}]   ;;  %s1026_s1 = inlined_call_operand.hbm [shape: f32[128,128], index: 1, kind: input, shape index: {}]   ;;  %s1027_s2 = inlined_call_operand.hbm [shape: f32[64,128], index: 2, kind: input, shape index: {}]   ;;  %s1028_s3 = inlined_call_operand.vmem [shape: f32[1,128], index: 3, kind: input, shape index: {}]   ;;  %s1029_s4 = inlined_call_operand.vmem [shape: f32[1,128], index: 4, kind: input, shape index: {}]   ;;  %s1030_s5 = inlined_call_operand.vmem [shape: f32[1,128], index: 5, kind: input, shape index: {}]   ;;  %s1031_s6 = inlined_call_operand.hbm [shape: f32[128,128], index: 6, kind: input, shape index: {}]   ;;  %s1032_s7 = inlined_call_operand.vmem [shape: f32[1,128], index: 7, kind: input, shape index: {}]   ;;  %s1033_s8 = inlined_call_operand.vmem [shape: f32[1,128], index: 8, kind: input, shape index: {}]   ;;  %s1034_s9 = inlined_call_operand.vmem [shape: f32[1,128], index: 9, kind: input, shape index: {}]   ;;  %s1035_s10 = inlined_call_operand.hbm [shape: f32[128,128], index: 10, kind: input, shape index: {}]   ;;  %s1036_s11 = inlined_call_operand.vmem [shape: f32[1,128], index: 11, kind: input, shape index: {}]   ;;  %s1037_s12 = inlined_call_operand.vmem [shape: f32[1,128], index: 12, kind: input, shape index: {}]   ;;  %s1038_s13 = inlined_call_operand.vmem [shape: f32[1,128], index: 13, kind: input, shape index: {}]   ;;  %s1039_s14 = inlined_call_operand.hbm [shape: f32[16,128], index: 14, kind: output, shape index: {}]  }
   0x1   :  { %20 = vsyncpa [#allocation6], 0 }
   0x2   :  { %21 = vsyncpa [#allocation9], 0 }
   0x3   :  { %22 = vsyncpa [#allocation4], 0  ;;  %s40_s15 = sshll.u32 %s1026_s1, 4  ;;  %s734_s16 = smov [#allocation5]   ;;  %s41_s15 = int_to_ptr.hbm [resolvable:$true] %s40_s15 }
   0x4   :  { %s42_s17 = sshll.u32 %s734_s16, 4  ;;  %s72_s20 = sshll.u32 %s1031_s6, 4  ;;  %s43_s17 = int_to_ptr.vmem [resolvable:$true] %s42_s17  ;;  %s73_s20 = int_to_ptr.hbm [resolvable:$true] %s72_s20 }
   0x5   :  { %s735_s21 = smov 128   ;;  %s736_s22 = smov 8  }
   0x6   :  { %48 = dma.hbm_to_vmem [thread:$0]  %s41_s15, 2048, %s43_s17, [#allocation6], %s735_s21, %s735_s21, %s736_s22  }
   0x7   :  { %s737_s23 = smov [#allocation8]   ;;  %s27_s1 = sshll.u32 %s1025_s0, 4  ;;  %s28_s1 = int_to_ptr.hbm [resolvable:$true] %s27_s1 }
   0x8   :  { %s74_s24 = sshll.u32 %s737_s23, 4  ;;  %s53_s28 = sshll.u32 %s1027_s2, 4  ;;  %s75_s24 = int_to_ptr.vmem [resolvable:$true] %s74_s24  ;;  %s54_s28 = int_to_ptr.hbm [resolvable:$true] %s53_s28 }
   0x9   :  { %80 = dma.hbm_to_vmem [thread:$0]  %s73_s20, 2048, %s75_s24, [#allocation9], %s735_s21, %s735_s21, %s736_s22  }
   0xa   :  { %s738_s29 = smov [#allocation2]   ;;  %s739_s15 = smov [#allocation7]  }
   0xb   :  { %s29_s30 = sshll.u32 %s738_s29, 4  ;;  %s55_s0 = sshll.u32 %s739_s15, 4  ;;  %s30_s30 = int_to_ptr.vmem [resolvable:$true] %s29_s30  ;;  %s56_s0 = int_to_ptr.vmem [resolvable:$true] %s55_s0 }
   0xc   :  { %35 = dma.hbm_to_vmem [thread:$0]  %s28_s1, 256, %s30_s30, [#allocation3], %s735_s21, %s735_s21, %s736_s22  }
   0xd   :  { %s91_s18 = sshll.u32 %s1035_s10, 4  ;;  %s740_s2 = smov [#allocation10]   ;;  %s92_s18 = int_to_ptr.hbm [resolvable:$true] %s91_s18 }
   0xe   :  { %61 = dma.hbm_to_vmem [thread:$0]  %s54_s28, 1024, %s56_s0, [#allocation6], %s735_s21, %s735_s21, %s736_s22  }
   0xf   :  { %s93_s19 = sshll.u32 %s740_s2, 4  ;;  %s94_s19 = int_to_ptr.vmem [resolvable:$true] %s93_s19 }
  0x10   :  { %99 = dma.hbm_to_vmem [thread:$0]  %s92_s18, 2048, %s94_s19, [#allocation9], %s735_s21, %s735_s21, %s736_s22  }
  0x11   :  { %726 = dma.done.wait [#allocation3], 256  }
  0x12   :  { %727 = vsyncadd [#allocation3], 4294967040 }
  0x13   :  { %728 = dma.done.wait [#allocation6], 3072  }
  0x14   :  { %729 = vsyncadd [#allocation6], 4294964224 }
  0x15   :  { %730 = dma.done.wait [#allocation9], 4096  }
  0x16   :  { %731 = vsyncadd [#allocation9], 4294963200  ;;  %v151_v0 = vld [vmem:[#allocation7 + $0x38] sm:$0xff]  ;;  %v150_v1 = vld [vmem:[#allocation7 + $0x30] sm:$0xff]  ;;  %vm156_vm0 = vcmask 523264   ;;  %s741_s30 = smov [#allocation11]  }
  0x17   :  { %171 = vmatpush.msra.mxu0 %v151_v0  ;;  %v149_v2 = vld [vmem:[#allocation7 + $0x28] sm:$0xff]  ;;  %v847_v3 = vld [vmem:[#allocation5 + $0x78] sm:$0xff]  ;;  %v849_v4 = vld [vmem:[#allocation5 + $0x70] sm:$0xff]  ;;  %s536_s16 = sshll.u32 %s1039_s14, 4  ;;  %s537_s16 = int_to_ptr.hbm [resolvable:$true] %s536_s16 }
  0x18   :  { %v148_v5 = vld [vmem:[#allocation7 + $0x20] sm:$0xff]  ;;  %188 = vmatpush.msra.mxu1 %v847_v3  ;;  %215 = vmatpush.msra.mxu2 %v847_v3  ;;  %v853_v6 = vld [vmem:[#allocation5 + $0x68] sm:$0xff]  ;;  %v147_v7 = vld [vmem:[#allocation7 + $0x18] sm:$0xff] }
  0x19   :  { %172 = vmatpush.msra.mxu0 %v150_v1  ;;  %v146_v8 = vld [vmem:[#allocation7 + $0x10] sm:$0xff]  ;;  %v857_v9 = vld [vmem:[#allocation5 + $0x60] sm:$0xff]  ;;  %v145_v10 = vld [vmem:[#allocation7 + $0x8] sm:$0xff] }
  0x1a   :  { %189 = vmatpush.msra.mxu1 %v849_v4  ;;  %216 = vmatpush.msra.mxu2 %v849_v4  ;;  %v860_v11 = vld [vmem:[#allocation5 + $0x58] sm:$0xff]  ;;  %v865_v12 = vld [vmem:[#allocation5 + $0x50] sm:$0xff]  ;;  %v144_v13 = vld [vmem:[#allocation7] sm:$0xff] }
  0x1b   :  { %173 = vmatpush.msra.mxu0 %v149_v2  ;;  %v126_v14 = vld [vmem:[#allocation2] sm:$0xff]  ;;  %v869_v15 = vld [vmem:[#allocation5 + $0x48] sm:$0xff]  ;;  %v873_v16 = vld [vmem:[#allocation5 + $0x40] sm:$0xff] }
  0x1c   :  { %190 = vmatpush.msra.mxu1 %v853_v6  ;;  %217 = vmatpush.msra.mxu2 %v853_v6  ;;  %v877_v17 = vld [vmem:[#allocation5 + $0x38] sm:$0xff]  ;;  %v882_v18 = vld [vmem:[#allocation5 + $0x30] sm:$0xff]  ;;  %v887_v20 = vld [vmem:[#allocation5 + $0x28] sm:$0xff] }
  0x1d   :  { %174 = vmatpush.msra.mxu0 %v148_v5  ;;  %v127_v19 = vld [vmem:[#allocation2 + $0x8] sm:$0xff]  ;;  %v892_v21 = vld [vmem:[#allocation5 + $0x20] sm:$0xff]  ;;  %v903_v23 = vld [vmem:[#allocation5 + $0x10] sm:$0xff] }
  0x1e   :  { %191 = vmatpush.msra.mxu1 %v857_v9  ;;  %218 = vmatpush.msra.mxu2 %v857_v9  ;;  %v898_v22 = vld [vmem:[#allocation5 + $0x18] sm:$0xff]  ;;  %v919_v24 = vld [vmem:[#allocation5 + $0x8] sm:$0xff]  ;;  %v923_v25 = vld [vmem:[#allocation5] sm:$0xff] }
  0x1f   :  { %175 = vmatpush.msra.mxu0 %v147_v7  ;;  %v561_v26 = vld [vmem:[%s1028_s3] ss:$0 sm:$0xff]  ;;  %v287_v31 = vld [vmem:[#allocation8 + $0x78] sm:$0xff]  ;;  %v285_v39 = vld [vmem:[#allocation8 + $0x68] sm:$0xff] }
  0x20   :  { %192 = vmatpush.msra.mxu1 %v860_v11  ;;  %219 = vmatpush.msra.mxu2 %v860_v11  ;;  %v286_v38 = vld [vmem:[#allocation8 + $0x70] sm:$0xff]  ;;  %v284_v40 = vld [vmem:[#allocation8 + $0x60] sm:$0xff]  ;;  %v283_v41 = vld [vmem:[#allocation8 + $0x58] sm:$0xff] }
  0x21   :  { %176 = vmatpush.msra.mxu0 %v146_v8  ;;  %292 = vmatpush.msra.mxu3 %v287_v31  ;;  %v282_v42 = vld [vmem:[#allocation8 + $0x50] sm:$0xff]  ;;  %v281_v43 = vld [vmem:[#allocation8 + $0x48] sm:$0xff]  ;;  %v280_v44 = vld [vmem:[#allocation8 + $0x40] sm:$0xff] }
  0x22   :  { %193 = vmatpush.msra.mxu1 %v865_v12  ;;  %220 = vmatpush.msra.mxu2 %v865_v12  ;;  %v279_v45 = vld [vmem:[#allocation8 + $0x38] sm:$0xff]  ;;  %v278_v46 = vld [vmem:[#allocation8 + $0x30] sm:$0xff]  ;;  %v277_v47 = vld [vmem:[#allocation8 + $0x28] sm:$0xff] }
  0x23   :  { %177 = vmatpush.msra.mxu0 %v145_v10  ;;  %293 = vmatpush.msra.mxu3 %v286_v38  ;;  %v276_v48 = vld [vmem:[#allocation8 + $0x20] sm:$0xff]  ;;  %v275_v49 = vld [vmem:[#allocation8 + $0x18] sm:$0xff]  ;;  %v274_v50 = vld [vmem:[#allocation8 + $0x10] sm:$0xff] }
  0x24   :  { %194 = vmatpush.msra.mxu1 %v869_v15  ;;  %221 = vmatpush.msra.mxu2 %v869_v15  ;;  %v273_v51 = vld [vmem:[#allocation8 + $0x8] sm:$0xff]  ;;  %v272_v52 = vld [vmem:[#allocation8] sm:$0xff]  ;;  %v562_v1 = vld [vmem:[%s1029_s4] ss:$0 sm:$0xff] }
  0x25   :  { %178 = vmatpush.msra.mxu0 %v144_v13  ;;  %294 = vmatpush.msra.mxu3 %v285_v39  ;;  %v563_v5 = vld [vmem:[%s1030_s5] ss:$0 sm:$0xff]  ;;  %v413_v31 = vld [vmem:[#allocation10 + $0x60] sm:$0xff]  ;;  %v406_v38 = vld [vmem:[#allocation10 + $0x28] sm:$0xff] }
  0x26   :  { %551 = vmatmul.msk.f32.vlgmr.msra.gmra.mxu0 %vm156_vm0, %v126_v14  ;;  %195 = vmatpush.msra.mxu1 %v873_v16  ;;  %v405_v39 = vld [vmem:[#allocation10 + $0x20] sm:$0xff] }
  0x27   :  { %317 = vmatpush.msrb.mxu0 %v847_v3  ;;  %222 = vmatpush.msra.mxu2 %v873_v16 }
  0x28   :  { %196 = vmatpush.msra.mxu1 %v877_v17  ;;  %295 = vmatpush.msra.mxu3 %v284_v40  ;;  %v404_v40 = vld [vmem:[#allocation10 + $0x18] sm:$0xff] }
  0x29   :  { %318 = vmatpush.msrb.mxu0 %v849_v4  ;;  %223 = vmatpush.msra.mxu2 %v877_v17 }
  0x2a   :  { %197 = vmatpush.msra.mxu1 %v882_v18  ;;  %296 = vmatpush.msra.mxu3 %v283_v41  ;;  %v403_v41 = vld [vmem:[#allocation10 + $0x10] sm:$0xff] }
  0x2b   :  { %319 = vmatpush.msrb.mxu0 %v853_v6  ;;  %224 = vmatpush.msra.mxu2 %v882_v18 }
  0x2c   :  { %198 = vmatpush.msra.mxu1 %v887_v20  ;;  %297 = vmatpush.msra.mxu3 %v282_v42  ;;  %v402_v42 = vld [vmem:[#allocation10 + $0x8] sm:$0xff] }
  0x2d   :  { %320 = vmatpush.msrb.mxu0 %v857_v9  ;;  %225 = vmatpush.msra.mxu2 %v887_v20 }
  0x2e   :  { %552 = vmatmul.msk.f32.gmra.mxu0 %vm156_vm0, %v127_v19  ;;  %199 = vmatpush.msra.mxu1 %v892_v21 }
  0x2f   :  { %321 = vmatpush.msrb.mxu0 %v860_v11  ;;  %226 = vmatpush.msra.mxu2 %v892_v21 }
  0x30   :  { %200 = vmatpush.msra.mxu1 %v898_v22  ;;  %298 = vmatpush.msra.mxu3 %v281_v43  ;;  %v401_v43 = vld [vmem:[#allocation10] sm:$0xff] }
  0x31   :  { %322 = vmatpush.msrb.mxu0 %v865_v12  ;;  %227 = vmatpush.msra.mxu2 %v898_v22 }
  0x32   :  { %201 = vmatpush.msra.mxu1 %v903_v23  ;;  %299 = vmatpush.msra.mxu3 %v280_v44 }
  0x33   :  { %323 = vmatpush.msrb.mxu0 %v869_v15  ;;  %228 = vmatpush.msra.mxu2 %v903_v23 }
  0x34   :  { %202 = vmatpush.msra.mxu1 %v919_v24  ;;  %300 = vmatpush.msra.mxu3 %v279_v45 }
  0x35   :  { %324 = vmatpush.msrb.mxu0 %v873_v16  ;;  %229 = vmatpush.msra.mxu2 %v919_v24 }
  0x36   :  { %203 = vmatpush.msra.mxu1 %v923_v25  ;;  %301 = vmatpush.msra.mxu3 %v278_v46 }
  0x37   :  { %325 = vmatpush.msrb.mxu0 %v877_v17  ;;  %230 = vmatpush.msra.mxu2 %v923_v25 }
  0x38   :  { %344 = vmatpush.msrb.mxu1 %v847_v3  ;;  %302 = vmatpush.msra.mxu3 %v277_v47 }
  0x39   :  { %326 = vmatpush.msrb.mxu0 %v882_v18 }
  0x3a   :  { %345 = vmatpush.msrb.mxu1 %v849_v4  ;;  %303 = vmatpush.msra.mxu3 %v276_v48 }
  0x3b   :  { %327 = vmatpush.msrb.mxu0 %v887_v20 }
  0x3c   :  { %346 = vmatpush.msrb.mxu1 %v853_v6  ;;  %304 = vmatpush.msra.mxu3 %v275_v49 }
  0x3d   :  { %328 = vmatpush.msrb.mxu0 %v892_v21 }
  0x3e   :  { %347 = vmatpush.msrb.mxu1 %v857_v9  ;;  %305 = vmatpush.msra.mxu3 %v274_v50 }
  0x3f   :  { %329 = vmatpush.msrb.mxu0 %v898_v22 }
  0x40   :  { %348 = vmatpush.msrb.mxu1 %v860_v11  ;;  %306 = vmatpush.msra.mxu3 %v273_v51 }
  0x41   :  { %330 = vmatpush.msrb.mxu0 %v903_v23 }
  0x42   :  { %349 = vmatpush.msrb.mxu1 %v865_v12  ;;  %307 = vmatpush.msra.mxu3 %v272_v52 }
  0x43   :  { %331 = vmatpush.msrb.mxu0 %v919_v24 }
  0x44   :  { %350 = vmatpush.msrb.mxu1 %v869_v15  ;;  %446 = vmatpush.msrb.mxu3 %v847_v3 }
  0x45   :  { %332 = vmatpush.msrb.mxu0 %v923_v25 }
  0x46   :  { %351 = vmatpush.msrb.mxu1 %v873_v16  ;;  %447 = vmatpush.msrb.mxu3 %v849_v4 }
  0x47   :  { %473 = vmatpush.msra.mxu0 %v847_v3 }
  0x48   :  { %352 = vmatpush.msrb.mxu1 %v877_v17  ;;  %448 = vmatpush.msrb.mxu3 %v853_v6 }
  0x49   :  { %474 = vmatpush.msra.mxu0 %v849_v4 }
  0x4a   :  { %353 = vmatpush.msrb.mxu1 %v882_v18  ;;  %449 = vmatpush.msrb.mxu3 %v857_v9 }
  0x4b   :  { %475 = vmatpush.msra.mxu0 %v853_v6 }
  0x4c   :  { %354 = vmatpush.msrb.mxu1 %v887_v20  ;;  %450 = vmatpush.msrb.mxu3 %v860_v11 }
  0x4d   :  { %476 = vmatpush.msra.mxu0 %v857_v9 }
  0x4e   :  { %355 = vmatpush.msrb.mxu1 %v892_v21  ;;  %451 = vmatpush.msrb.mxu3 %v865_v12 }
  0x4f   :  { %477 = vmatpush.msra.mxu0 %v860_v11 }
  0x50   :  { %356 = vmatpush.msrb.mxu1 %v898_v22  ;;  %452 = vmatpush.msrb.mxu3 %v869_v15 }
  0x51   :  { %478 = vmatpush.msra.mxu0 %v865_v12 }
  0x52   :  { %357 = vmatpush.msrb.mxu1 %v903_v23  ;;  %453 = vmatpush.msrb.mxu3 %v873_v16 }
  0x53   :  { %479 = vmatpush.msra.mxu0 %v869_v15 }
  0x54   :  { %358 = vmatpush.msrb.mxu1 %v919_v24  ;;  %454 = vmatpush.msrb.mxu3 %v877_v17 }
  0x55   :  { %480 = vmatpush.msra.mxu0 %v873_v16 }
  0x56   :  { %359 = vmatpush.msrb.mxu1 %v923_v25  ;;  %455 = vmatpush.msrb.mxu3 %v882_v18 }
  0x57   :  { %481 = vmatpush.msra.mxu0 %v877_v17  ;;  %v564_v17 = vld [vmem:[%s1032_s7] ss:$0 sm:$0xff] }
  0x58   :  { %456 = vmatpush.msrb.mxu3 %v887_v20 }
  0x59   :  { %482 = vmatpush.msra.mxu0 %v882_v18 }
  0x5a   :  { %457 = vmatpush.msrb.mxu3 %v892_v21 }
  0x5b   :  { %483 = vmatpush.msra.mxu0 %v887_v20 }
  0x5c   :  { %458 = vmatpush.msrb.mxu3 %v898_v22 }
  0x5d   :  { %484 = vmatpush.msra.mxu0 %v892_v21 }
  0x5e   :  { %459 = vmatpush.msrb.mxu3 %v903_v23 }
  0x5f   :  { %485 = vmatpush.msra.mxu0 %v898_v22  ;;  %v416_v22 = vld [vmem:[#allocation10 + $0x78] sm:$0xff] }
  0x60   :  { %460 = vmatpush.msrb.mxu3 %v919_v24  ;;  %421 = vmatpush.msrb.mxu2 %v416_v22 }
  0x61   :  { %486 = vmatpush.msra.mxu0 %v903_v23 }
  0x62   :  { %461 = vmatpush.msrb.mxu3 %v923_v25 }
  0x63   :  { %487 = vmatpush.msra.mxu0 %v919_v24 }
  0x65   :  { %488 = vmatpush.msra.mxu0 %v923_v25 }
  0xa3   :  { %v180_v27 = vpop.f32.mrf.mxu0 }
  0xa4   :  { %v181_v28 = vadd.f32 %v561_v26, %v180_v27 }
  0xa6   :  { %204 = vmatmul.f32.vlgmr.msra.gmra.mxu1 %v181_v28 }
  0xab   :  { %v183_v29 = vpop.f32.mrf.mxu0 }
  0xac   :  { %v184_v30 = vadd.f32 %v561_v26, %v183_v29  ;;  %v415_v29 = vld [vmem:[#allocation10 + $0x70] sm:$0xff] }
  0xad   :  { %422 = vmatpush.msrb.mxu2 %v415_v29 }
  0xae   :  { %207 = vmatmul.f32.gmra.mxu1 %v184_v30 }
 0x123   :  { %v205_v32 = vpop.f32.mrf.mxu1 }
 0x124   :  { %v964_v33 = vsub.f32 %v181_v28, %v205_v32  ;;  %v412_v32 = vld [vmem:[#allocation10 + $0x58] sm:$0xff] }
 0x126   :  { %v213_v34 = vmul.f32 %v964_v33, %v964_v33 }
 0x128   :  { %231 = vmatmul.f32.vlgmr.msra.gmra.mxu2 %v213_v34  ;;  %v410_v34 = vld [vmem:[#allocation10 + $0x48] sm:$0xff] }
 0x12b   :  { %v208_v35 = vpop.f32.mrf.mxu1 }
 0x12c   :  { %v968_v36 = vsub.f32 %v184_v30, %v208_v35  ;;  %v414_v30 = vld [vmem:[#allocation10 + $0x68] sm:$0xff]  ;;  %v409_v35 = vld [vmem:[#allocation10 + $0x40] sm:$0xff] }
 0x12d   :  { %423 = vmatpush.msrb.mxu2 %v414_v30 }
 0x12e   :  { %v214_v37 = vmul.f32 %v968_v36, %v968_v36 }
 0x12f   :  { %424 = vmatpush.msrb.mxu2 %v413_v31  ;;  %v568_v31 = vld [vmem:[%s1037_s12] ss:$0 sm:$0xff]  ;;  %s534_s12 = sshll.u32 %s741_s30, 4  ;;  %s535_s12 = int_to_ptr.vmem [resolvable:$true] %s534_s12 }
 0x130   :  { %234 = vmatmul.f32.gmra.mxu2 %v214_v37  ;;  %v407_v37 = vld [vmem:[#allocation10 + $0x30] sm:$0xff] }
 0x131   :  { %425 = vmatpush.msrb.mxu2 %v412_v32 }
 0x1ab   :  { %v232_v53 = vpop.f32.mrf.mxu2 }
 0x1ac   :  { %v233_v54 = vadd.f32 1e-05, %v232_v53 }
 0x1ae   :  { %570 = vrsqrt.f32 %v233_v54  ;;  %vm244_vm2 = vweird.f32 %v233_v54 }
 0x1b3   :  { %v235_v55 = vpop.f32.mrf.mxu2 }
 0x1b4   :  { %v571_v56 = vpop.eup %570  ;;  %v236_v57 = vadd.f32 1e-05, %v235_v55 }
 0x1b5   :  { %v239_v58 = vmul.f32 %v571_v56, %v233_v54  ;;  %vm245_vm1 = vweird.f32 %v571_v56 }
 0x1b6   :  { %572 = vrsqrt.f32 %v236_v57  ;;  %vm246_vm3 = vmor %vm244_vm2, %vm245_vm1  ;;  %vm254_vm5 = vweird.f32 %v236_v57 }
 0x1b7   :  { %v240_v59 = vmul.f32 %v571_v56, %v239_v58 }
 0x1b9   :  { %v241_v60 = vmul.f32 0.5, %v240_v59 }
 0x1bb   :  { %v242_v61 = vsub.f32 1.5, %v241_v60  ;;  %v566_v60 = vld [vmem:[%s1034_s9] ss:$0 sm:$0xff] }
 0x1bc   :  { %v573_v62 = vpop.eup %572 }
 0x1bd   :  { %v243_v63 = vmul.f32 %v571_v56, %v242_v61  ;;  %v249_v0 = vmul.f32 %v573_v62, %v236_v57  ;;  %vm255_vm4 = vweird.f32 %v573_v62 }
 0x1be   :  { %vm256_vm6 = vmor %vm254_vm5, %vm255_vm4 }
 0x1bf   :  { %v250_v2 = vmul.f32 %v573_v62, %v249_v0  ;;  %v247_v3 = vsel %vm246_vm3, %v571_v56, %v243_v63  ;;  %v565_v56 = vld [vmem:[%s1033_s8] ss:$0 sm:$0xff] }
 0x1c0   :  { %v258_v4 = vmul.f32 %v247_v3, %v964_v33  ;;  %v411_v33 = vld [vmem:[#allocation10 + $0x50] sm:$0xff] }
 0x1c1   :  { %v251_v6 = vmul.f32 0.5, %v250_v2  ;;  %426 = vmatpush.msrb.mxu2 %v411_v33 }
 0x1c2   :  { %v263_v7 = vmul.f32 %v562_v1, %v258_v4 }
 0x1c3   :  { %v252_v8 = vsub.f32 1.5, %v251_v6  ;;  %427 = vmatpush.msrb.mxu2 %v410_v34 }
 0x1c4   :  { %v268_v9 = vadd.f32 %v563_v5, %v263_v7 }
 0x1c5   :  { %v253_v10 = vmul.f32 %v573_v62, %v252_v8  ;;  %428 = vmatpush.msrb.mxu2 %v409_v35  ;;  %v567_v8 = vld [vmem:[%s1036_s11] ss:$0 sm:$0xff] }
 0x1c6   :  { %v270_v11 = vmax.f32 %v268_v9, 0.0  ;;  %v569_v35 = vld [vmem:[%s1038_s13] ss:$0 sm:$0xff] }
 0x1c7   :  { %v257_v12 = vsel %vm256_vm6, %v573_v62, %v253_v10 }
 0x1c8   :  { %308 = vmatmul.f32.vlgmr.msra.gmra.mxu3 %v270_v11  ;;  %v259_v13 = vmul.f32 %v257_v12, %v968_v36  ;;  %v408_v36 = vld [vmem:[#allocation10 + $0x38] sm:$0xff] }
 0x1c9   :  { %429 = vmatpush.msrb.mxu2 %v408_v36 }
 0x1ca   :  { %v264_v14 = vmul.f32 %v562_v1, %v259_v13 }
 0x1cb   :  { %430 = vmatpush.msrb.mxu2 %v407_v37 }
 0x1cc   :  { %v269_v15 = vadd.f32 %v563_v5, %v264_v14 }
 0x1cd   :  { %431 = vmatpush.msrb.mxu2 %v406_v38 }
 0x1ce   :  { %v271_v16 = vmax.f32 %v269_v15, 0.0 }
 0x1cf   :  { %432 = vmatpush.msrb.mxu2 %v405_v39 }
 0x1d0   :  { %311 = vmatmul.f32.gmra.mxu3 %v271_v16 }
 0x1d1   :  { %433 = vmatpush.msrb.mxu2 %v404_v40 }
 0x1d3   :  { %434 = vmatpush.msrb.mxu2 %v403_v41 }
 0x1d5   :  { %435 = vmatpush.msrb.mxu2 %v402_v42 }
 0x1d7   :  { %436 = vmatpush.msrb.mxu2 %v401_v43 }
 0x24b   :  { %v309_v18 = vpop.f32.mrf.mxu3 }
 0x24c   :  { %v310_v19 = vadd.f32 %v564_v17, %v309_v18 }
 0x24e   :  { %333 = vmatmul.f32.vlgmr.msrb.gmra.mxu0 %v310_v19 }
 0x253   :  { %v312_v20 = vpop.f32.mrf.mxu3 }
 0x254   :  { %v313_v21 = vadd.f32 %v564_v17, %v312_v20 }
 0x256   :  { %336 = vmatmul.f32.gmra.mxu0 %v313_v21 }
 0x2cb   :  { %v334_v23 = vpop.f32.mrf.mxu0 }
 0x2cc   :  { %v340_v24 = vsub.f32 %v310_v19, %v334_v23 }
 0x2ce   :  { %v342_v25 = vmul.f32 %v340_v24, %v340_v24 }
 0x2d0   :  { %360 = vmatmul.f32.vlgmr.msrb.gmra.mxu1 %v342_v25 }
 0x2d3   :  { %v337_v26 = vpop.f32.mrf.mxu0 }
 0x2d4   :  { %v999_v27 = vsub.f32 %v313_v21, %v337_v26 }
 0x2d6   :  { %v343_v28 = vmul.f32 %v999_v27, %v999_v27 }
 0x2d8   :  { %363 = vmatmul.f32.gmra.mxu1 %v343_v28 }
 0x34d   :  { %v361_v44 = vpop.f32.mrf.mxu1 }
 0x34e   :  { %v362_v45 = vadd.f32 1e-05, %v361_v44 }
 0x350   :  { %574 = vrsqrt.f32 %v362_v45  ;;  %vm373_vm8 = vweird.f32 %v362_v45 }
 0x355   :  { %v364_v46 = vpop.f32.mrf.mxu1 }
 0x356   :  { %v575_v47 = vpop.eup %574  ;;  %v365_v48 = vadd.f32 1e-05, %v364_v46 }
 0x357   :  { %v368_v49 = vmul.f32 %v575_v47, %v362_v45  ;;  %vm374_vm7 = vweird.f32 %v575_v47 }
 0x358   :  { %576 = vrsqrt.f32 %v365_v48  ;;  %vm375_vm9 = vmor %vm373_vm8, %vm374_vm7  ;;  %vm383_vm11 = vweird.f32 %v365_v48 }
 0x359   :  { %v369_v50 = vmul.f32 %v575_v47, %v368_v49 }
 0x35b   :  { %v370_v51 = vmul.f32 0.5, %v369_v50 }
 0x35d   :  { %v371_v52 = vsub.f32 1.5, %v370_v51 }
 0x35e   :  { %v577_v53 = vpop.eup %576 }
 0x35f   :  { %v372_v54 = vmul.f32 %v575_v47, %v371_v52  ;;  %v378_v55 = vmul.f32 %v577_v53, %v365_v48  ;;  %vm384_vm10 = vweird.f32 %v577_v53 }
 0x360   :  { %vm385_vm12 = vmor %vm383_vm11, %vm384_vm10 }
 0x361   :  { %v376_v57 = vsel %vm375_vm9, %v575_v47, %v372_v54  ;;  %v379_v58 = vmul.f32 %v577_v53, %v378_v55 }
 0x362   :  { %v387_v59 = vmul.f32 %v376_v57, %v340_v24 }
 0x363   :  { %v380_v61 = vmul.f32 0.5, %v379_v58 }
 0x364   :  { %v392_v62 = vmul.f32 %v565_v56, %v387_v59 }
 0x365   :  { %v381_v63 = vsub.f32 1.5, %v380_v61 }
 0x366   :  { %v397_v0 = vadd.f32 %v566_v60, %v392_v62 }
 0x367   :  { %v382_v1 = vmul.f32 %v577_v53, %v381_v63 }
 0x368   :  { %v399_v2 = vmax.f32 %v397_v0, 0.0 }
 0x369   :  { %v386_v3 = vsel %vm385_vm12, %v577_v53, %v382_v1 }
 0x36a   :  { %437 = vmatmul.f32.vlgmr.msrb.gmra.mxu2 %v399_v2  ;;  %v388_v4 = vmul.f32 %v386_v3, %v999_v27 }
 0x36c   :  { %v393_v5 = vmul.f32 %v565_v56, %v388_v4 }
 0x36e   :  { %v398_v6 = vadd.f32 %v566_v60, %v393_v5 }
 0x370   :  { %v400_v7 = vmax.f32 %v398_v6, 0.0 }
 0x372   :  { %440 = vmatmul.f32.gmra.mxu2 %v400_v7 }
 0x3ed   :  { %v438_v9 = vpop.f32.mrf.mxu2 }
 0x3ee   :  { %v439_v10 = vadd.f32 %v567_v8, %v438_v9 }
 0x3f0   :  { %462 = vmatmul.f32.vlgmr.msrb.gmra.mxu3 %v439_v10 }
 0x3f5   :  { %v441_v11 = vpop.f32.mrf.mxu2 }
 0x3f6   :  { %v442_v12 = vadd.f32 %v567_v8, %v441_v11 }
 0x3f8   :  { %465 = vmatmul.f32.gmra.mxu3 %v442_v12 }
 0x473   :  { %v463_v13 = vpop.f32.mrf.mxu3 }
 0x474   :  { %v469_v14 = vsub.f32 %v439_v10, %v463_v13 }
 0x476   :  { %v471_v15 = vmul.f32 %v469_v14, %v469_v14 }
 0x478   :  { %489 = vmatmul.f32.vlgmr.msra.gmra.mxu0 %v471_v15 }
 0x47b   :  { %v466_v16 = vpop.f32.mrf.mxu3 }
 0x47c   :  { %v470_v17 = vsub.f32 %v442_v12, %v466_v16 }
 0x47e   :  { %v472_v18 = vmul.f32 %v470_v17, %v470_v17 }
 0x480   :  { %492 = vmatmul.f32.gmra.mxu0 %v472_v18 }
 0x4f5   :  { %v490_v19 = vpop.f32.mrf.mxu0 }
 0x4f6   :  { %v491_v20 = vadd.f32 1e-05, %v490_v19 }
 0x4f8   :  { %578 = vrsqrt.f32 %v491_v20  ;;  %vm502_vm14 = vweird.f32 %v491_v20 }
 0x4fd   :  { %v493_v21 = vpop.f32.mrf.mxu0 }
 0x4fe   :  { %v579_v22 = vpop.eup %578  ;;  %v494_v23 = vadd.f32 1e-05, %v493_v21 }
 0x4ff   :  { %v497_v24 = vmul.f32 %v579_v22, %v491_v20  ;;  %vm503_vm13 = vweird.f32 %v579_v22 }
 0x500   :  { %580 = vrsqrt.f32 %v494_v23  ;;  %vm504_vm15 = vmor %vm502_vm14, %vm503_vm13  ;;  %vm512_vm1 = vweird.f32 %v494_v23 }
 0x501   :  { %v498_v25 = vmul.f32 %v579_v22, %v497_v24 }
 0x503   :  { %v499_v26 = vmul.f32 0.5, %v498_v25 }
 0x505   :  { %v500_v27 = vsub.f32 1.5, %v499_v26 }
 0x506   :  { %v581_v28 = vpop.eup %580 }
 0x507   :  { %v501_v29 = vmul.f32 %v579_v22, %v500_v27  ;;  %v507_v30 = vmul.f32 %v581_v28, %v494_v23  ;;  %vm513_vm0 = vweird.f32 %v581_v28 }
 0x508   :  { %vm514_vm2 = vmor %vm512_vm1, %vm513_vm0 }
 0x509   :  { %v505_v32 = vsel %vm504_vm15, %v579_v22, %v501_v29  ;;  %v508_v33 = vmul.f32 %v581_v28, %v507_v30 }
 0x50a   :  { %v516_v34 = vmul.f32 %v505_v32, %v469_v14 }
 0x50b   :  { %v509_v36 = vmul.f32 0.5, %v508_v33 }
 0x50c   :  { %v521_v37 = vmul.f32 %v568_v31, %v516_v34 }
 0x50d   :  { %v510_v38 = vsub.f32 1.5, %v509_v36 }
 0x50e   :  { %v526_v39 = vadd.f32 %v569_v35, %v521_v37 }
 0x50f   :  { %v511_v40 = vmul.f32 %v581_v28, %v510_v38 }
 0x510   :  { %528 = vst [vmem:[#allocation11] sm:$0xff] %v526_v39 }
 0x511   :  { %v515_v41 = vsel %vm514_vm2, %v581_v28, %v511_v40 }
 0x512   :  { %v517_v42 = vmul.f32 %v515_v41, %v470_v17 }
 0x514   :  { %v522_v43 = vmul.f32 %v568_v31, %v517_v42 }
 0x516   :  { %v527_v44 = vadd.f32 %v569_v35, %v522_v43 }
 0x518   :  { %529 = vst [vmem:[#allocation11 + $0x8] sm:$0xff] %v527_v44 }
 0x519   :  { %542 = dma.vmem_to_hbm [thread:$0]  %s535_s12, 256, %s537_s16, [#allocation4], %s735_s21, %s735_s21, %s736_s22  }
 0x51a   :  { %732 = dma.done.wait [#allocation4], 256  }
 0x51b   :  { %733 = vsyncadd [#allocation4], 4294967040 }
 0x51c   :  { %547 = vsyncpa [#allocation3], 1 }
 0x51d   :  { %548 = vsyncpa [#allocation6], 1 }
 0x51e   :  { %549 = vsyncpa [#allocation9], 1 }
 0x51f   :  { %550 = vsyncpa [#allocation4], 1 }

</bundles_post_ra>
